<compile_context>
chip_gen: v7x
topology: tpu7x:2x2x1
jax: 0.10.0
libtpu: 0.0.40
codegen_flags: <defaults>
</compile_context>

<pallas_src>
import jax
import jax.numpy as jnp
from jax.experimental import pallas as pl
from jax.experimental.pallas import tpu as pltpu

HIDDEN_SIZE_1 = 256
LANE = 128                         # final layer padded to a multiple of this
TILE_B_MAX = 2048                  # batch rows per grid step (mult. of 256 for 2x256 MXUs)
MIN_SPLIT_ROWS = 512               # if B >= 2*this, force >=2 grid steps (v7x 2-TC sharding)
VMEM_LIMIT_BYTES = 40 * 1024 * 1024  # explicit scoped-VMEM limit, safe on v5e/v6e/v7x


def _round_up(x, m):
    return (x + m - 1) // m * m


def _mlp_kernel(x_ref, w1_ref, b1_ref, w2_ref, b2_ref, w3_ref, b3_ref, o_ref):
    # bf16 MXU inputs, f32 accumulation (preferred_element_type), bf16 store.
    x = x_ref[...].astype(jnp.bfloat16)
    h1 = jnp.dot(x, w1_ref[...], preferred_element_type=jnp.float32) + b1_ref[...]
    h1 = jnp.maximum(h1, 0.0).astype(jnp.bfloat16)
    h2 = jnp.dot(h1, w2_ref[...], preferred_element_type=jnp.float32) + b2_ref[...]
    h2 = jnp.maximum(h2, 0.0).astype(jnp.bfloat16)
    out = jnp.dot(h2, w3_ref[...], preferred_element_type=jnp.float32) + b3_ref[...]
    o_ref[...] = out.astype(o_ref.dtype)


def _const_spec(a):
    """Constant-index block: DMA'd once, VMEM-resident across all grid steps.

    Single-buffered (pl.Buffered(1)) since it is never re-fetched; falls back to the
    default pipeline mode if this JAX version does not accept pipeline_mode here.
    """
    idx_map = lambda i: (0,) * a.ndim
    try:
        return pl.BlockSpec(a.shape, idx_map, pipeline_mode=pl.Buffered(1))
    except Exception:  # pragma: no cover - older/newer API without pipeline_mode
        return pl.BlockSpec(a.shape, idx_map)


def net_forward(x, params, n_actions, *, tile_b_max=TILE_B_MAX):
    """Fused MLP forward. x: [B, obs_size] f32 -> [B, n_actions] f32 logits."""
    w1, b1, w2, b2, w3, b3 = params  # w3/b3 already lane-padded to a multiple of 128
    B, obs = x.shape
    n_pad = w3.shape[1]

    # Balanced batch split: choose the number of grid steps first, then an
    # 8-aligned tile, so B just above a tile multiple doesn't double padded work.
    num_tiles = pl.cdiv(B, tile_b_max)
    if B >= 2 * MIN_SPLIT_ROWS:
        # >= 2 steps lets the "parallel" batch axis shard across v7x's two TCs.
        num_tiles = max(num_tiles, 2)
    tile_b = _round_up(pl.cdiv(B, num_tiles), 8)
    Bp = tile_b * num_tiles
    if Bp != B:
        x = jnp.pad(x, ((0, Bp - B), (0, 0)))
    grid = (num_tiles,)

    flops = 2 * Bp * (obs * HIDDEN_SIZE_1
                      + HIDDEN_SIZE_1 * HIDDEN_SIZE_1
                      + HIDDEN_SIZE_1 * n_pad)
    bytes_accessed = int(
        Bp * obs * 4                                            # x (f32) in
        + sum(int(p.size) * p.dtype.itemsize for p in params)   # weights (once)
        + Bp * n_pad * 2                                        # bf16 logits slab out
    )

    out = pl.pallas_call(
        _mlp_kernel,
        # bf16 store: the 128-wide slab is mostly padding, so halving the
        # writeback (and the wrapper's re-read of it) is the cheap memory win.
        out_shape=jax.ShapeDtypeStruct((Bp, n_pad), jnp.bfloat16),
        grid=grid,
        in_specs=[
            pl.BlockSpec((tile_b, obs), lambda i: (i, 0)),
            _const_spec(w1), _const_spec(b1),
            _const_spec(w2), _const_spec(b2),
            _const_spec(w3), _const_spec(b3),
        ],
        out_specs=pl.BlockSpec((tile_b, n_pad), lambda i: (i, 0)),
        compiler_params=pltpu.CompilerParams(
            dimension_semantics=("parallel",),
            vmem_limit_bytes=VMEM_LIMIT_BYTES,
        ),
        cost_estimate=pl.CostEstimate(
            flops=flops, transcendentals=0, bytes_accessed=bytes_accessed),
    )(x, w1, b1, w2, b2, w3, b3)

    # Drop batch/lane padding; cast logits back to f32 for downstream loss math.
    return out[:B, :n_actions].astype(jnp.float32)


def init_params(key, obs_size, n_actions):
    """PyTorch-nn.Linear-style init (uniform +-1/sqrt(fan_in)).

    Weights: bf16 [in_features, out_features]; biases: f32 [1, out].
    Final layer zero-padded on the output dim to a multiple of 128 so the
    kernel's output store is lane-dense.
    """
    def linear(key, fan_in, fan_out):
        kw, kb = jax.random.split(key)
        bound = 1.0 / jnp.sqrt(fan_in)
        w = jax.random.uniform(kw, (fan_in, fan_out), jnp.float32, -bound, bound)
        b = jax.random.uniform(kb, (1, fan_out), jnp.float32, -bound, bound)
        return w.astype(jnp.bfloat16), b

    k1, k2, k3 = jax.random.split(key, 3)
    w1, b1 = linear(k1, obs_size, HIDDEN_SIZE_1)
    w2, b2 = linear(k2, HIDDEN_SIZE_1, HIDDEN_SIZE_1)
    w3, b3 = linear(k3, HIDDEN_SIZE_1, n_actions)

    n_pad = _round_up(n_actions, LANE)
    w3 = jnp.pad(w3, ((0, 0), (0, n_pad - n_actions)))
    b3 = jnp.pad(b3, ((0, 0), (0, n_pad - n_actions)))
    return (w1, b1, w2, b2, w3, b3)


def reference_forward(x, params, n_actions):
    """Pure-JAX reference using the same (bf16) weights, computed in f32."""
    w1, b1, w2, b2, w3, b3 = params
    w1, w2, w3 = (w.astype(jnp.float32) for w in (w1, w2, w3))
    h1 = jnp.maximum(x @ w1 + b1, 0.0)
    h2 = jnp.maximum(h1 @ w2 + b2, 0.0)
    return (h2 @ w3 + b3)[:, :n_actions]


if __name__ == "__main__":
    obs_size = 32
    n_actions = 4

    key = jax.random.PRNGKey(0)
    kx, kp, kx2, kx3 = jax.random.split(key, 4)
    params = init_params(kp, obs_size, n_actions)

    # 1) Small-batch case (typical RL rollout size) -> single grid step.
    batch = 8
    x = jax.random.normal(kx, (batch, obs_size), jnp.float32)
    out = jax.block_until_ready(net_forward(x, params, n_actions))
    ref = reference_forward(x, params, n_actions)
    assert out.shape == (batch, n_actions)
    assert out.dtype == jnp.float32
    assert jnp.allclose(out, ref, atol=3e-2, rtol=3e-2), float(jnp.max(jnp.abs(out - ref)))

    # 2) Non-tile-multiple batch with a small tile cap -> multi-step grid + balanced split.
    batch2 = 300
    x2 = jax.random.normal(kx2, (batch2, obs_size), jnp.float32)
    out2 = jax.block_until_ready(net_forward(x2, params, n_actions, tile_b_max=128))
    ref2 = reference_forward(x2, params, n_actions)
    assert out2.shape == (batch2, n_actions)
    assert jnp.allclose(out2, ref2, atol=3e-2, rtol=3e-2), float(jnp.max(jnp.abs(out2 - ref2)))

    # 3) Batch just above 1024 -> forced 2-way balanced split (552-row tiles, not a
    #    2048-row padded monolith), exercising the v7x two-TC sharding path.
    batch3 = 1100
    x3 = jax.random.normal(kx3, (batch3, obs_size), jnp.float32)
    out3 = jax.block_until_ready(net_forward(x3, params, n_actions))
    ref3 = reference_forward(x3, params, n_actions)
    assert out3.shape == (batch3, n_actions)
    assert jnp.allclose(out3, ref3, atol=3e-2, rtol=3e-2), float(jnp.max(jnp.abs(out3 - ref3)))

    print("KERNEL_OK")
</pallas_src>

<mosaic_0001>
module attributes {stable_mosaic.version = 11 : i64} {
  func.func @_mlp_kernel(%arg0: i32, %arg1: memref<8x32xf32, #tpu.memory_space<vmem>>, %arg2: memref<32x256xbf16, #tpu.memory_space<vmem>>, %arg3: memref<1x256xf32, #tpu.memory_space<vmem>>, %arg4: memref<256x256xbf16, #tpu.memory_space<vmem>>, %arg5: memref<1x256xf32, #tpu.memory_space<vmem>>, %arg6: memref<256x128xbf16, #tpu.memory_space<vmem>>, %arg7: memref<1x128xf32, #tpu.memory_space<vmem>>, %arg8: memref<8x128xbf16, #tpu.memory_space<vmem>>) attributes {dimension_semantics = [#tpu.dimension_semantics<parallel>], iteration_bounds = array<i64: 1>, scalar_prefetch = 0 : i64, scratch_operands = 0 : i64, tpu.core_type = #tpu.core_type<tc>, window_params = [{transform_indices = @transform_0, window_bounds = array<i64: 8, 32>}, {pipeline_mode = #tpu.pipeline_mode<synchronous>, transform_indices = @transform_1, window_bounds = array<i64: 32, 256>}, {pipeline_mode = #tpu.pipeline_mode<synchronous>, transform_indices = @transform_2, window_bounds = array<i64: 1, 256>}, {pipeline_mode = #tpu.pipeline_mode<synchronous>, transform_indices = @transform_3, window_bounds = array<i64: 256, 256>}, {pipeline_mode = #tpu.pipeline_mode<synchronous>, transform_indices = @transform_4, window_bounds = array<i64: 1, 256>}, {pipeline_mode = #tpu.pipeline_mode<synchronous>, transform_indices = @transform_5, window_bounds = array<i64: 256, 128>}, {pipeline_mode = #tpu.pipeline_mode<synchronous>, transform_indices = @transform_6, window_bounds = array<i64: 1, 128>}, {transform_indices = @transform_7, window_bounds = array<i64: 8, 128>}]} {
    %c0 = arith.constant 0 : index
    %c0_0 = arith.constant 0 : index
    %0 = vector.load %arg1[%c0, %c0_0] : memref<8x32xf32, #tpu.memory_space<vmem>>, vector<8x32xf32>
    %1 = arith.truncf %0 : vector<8x32xf32> to vector<8x32xbf16>
    %c0_1 = arith.constant 0 : index
    %c0_2 = arith.constant 0 : index
    %2 = vector.load %arg2[%c0_1, %c0_2] : memref<32x256xbf16, #tpu.memory_space<vmem>>, vector<32x256xbf16>
    %cst = arith.constant dense<0.000000e+00> : vector<8x256xf32>
    %3 = tpu.matmul %1, %2, %cst {dimension_numbers = #tpu.dot_dimension_numbers<[1], [0], [0], [1], [0, 0, 1, 1], [], []>} : vector<8x32xbf16>, vector<32x256xbf16>, vector<8x256xf32> -> vector<8x256xf32>
    %c0_3 = arith.constant 0 : index
    %c0_4 = arith.constant 0 : index
    %4 = vector.load %arg3[%c0_3, %c0_4] : memref<1x256xf32, #tpu.memory_space<vmem>>, vector<1x256xf32>
    %5 = vector.broadcast %4 : vector<1x256xf32> to vector<8x256xf32>
    %6 = arith.addf %3, %5 : vector<8x256xf32>
    %cst_5 = arith.constant 0.000000e+00 : f32
    %7 = vector.broadcast %cst_5 : f32 to vector<8x256xf32>
    %8 = arith.maximumf %6, %7 : vector<8x256xf32>
    %9 = arith.truncf %8 : vector<8x256xf32> to vector<8x256xbf16>
    %c0_6 = arith.constant 0 : index
    %c0_7 = arith.constant 0 : index
    %10 = vector.load %arg4[%c0_6, %c0_7] : memref<256x256xbf16, #tpu.memory_space<vmem>>, vector<256x256xbf16>
    %cst_8 = arith.constant dense<0.000000e+00> : vector<8x256xf32>
    %11 = tpu.matmul %9, %10, %cst_8 {dimension_numbers = #tpu.dot_dimension_numbers<[1], [0], [0], [1], [0, 0, 1, 1], [], []>} : vector<8x256xbf16>, vector<256x256xbf16>, vector<8x256xf32> -> vector<8x256xf32>
    %c0_9 = arith.constant 0 : index
    %c0_10 = arith.constant 0 : index
    %12 = vector.load %arg5[%c0_9, %c0_10] : memref<1x256xf32, #tpu.memory_space<vmem>>, vector<1x256xf32>
    %13 = vector.broadcast %12 : vector<1x256xf32> to vector<8x256xf32>
    %14 = arith.addf %11, %13 : vector<8x256xf32>
    %cst_11 = arith.constant 0.000000e+00 : f32
    %15 = vector.broadcast %cst_11 : f32 to vector<8x256xf32>
    %16 = arith.maximumf %14, %15 : vector<8x256xf32>
    %17 = arith.truncf %16 : vector<8x256xf32> to vector<8x256xbf16>
    %c0_12 = arith.constant 0 : index
    %c0_13 = arith.constant 0 : index
    %18 = vector.load %arg6[%c0_12, %c0_13] : memref<256x128xbf16, #tpu.memory_space<vmem>>, vector<256x128xbf16>
    %cst_14 = arith.constant dense<0.000000e+00> : vector<8x128xf32>
    %19 = tpu.matmul %17, %18, %cst_14 {dimension_numbers = #tpu.dot_dimension_numbers<[1], [0], [0], [1], [0, 0, 1, 1], [], []>} : vector<8x256xbf16>, vector<256x128xbf16>, vector<8x128xf32> -> vector<8x128xf32>
    %c0_15 = arith.constant 0 : index
    %c0_16 = arith.constant 0 : index
    %20 = vector.load %arg7[%c0_15, %c0_16] : memref<1x128xf32, #tpu.memory_space<vmem>>, vector<1x128xf32>
    %21 = vector.broadcast %20 : vector<1x128xf32> to vector<8x128xf32>
    %22 = arith.addf %19, %21 : vector<8x128xf32>
    %23 = arith.truncf %22 : vector<8x128xf32> to vector<8x128xbf16>
    %c0_17 = arith.constant 0 : index
    %c0_18 = arith.constant 0 : index
    %24 = vector.load %arg8[%c0_17, %c0_18] : memref<8x128xbf16, #tpu.memory_space<vmem>>, vector<8x128xbf16>
    tpu.vector_store %arg8[%c0_17, %c0_18], %23 {strides = array<i32>} : memref<8x128xbf16, #tpu.memory_space<vmem>>, vector<8x128xbf16>,
    return
  }
  func.func @transform_0(%arg0: i32) -> (i32, i32) {
    %c0_i32 = arith.constant 0 : i32
    %c0_i32_0 = arith.constant 0 : i32
    return %arg0, %c0_i32 : i32, i32
  }
  func.func @transform_1(%arg0: i32) -> (i32, i32) {
    %c0_i32 = arith.constant 0 : i32
    %c0_i32_0 = arith.constant 0 : i32
    %c0_i32_1 = arith.constant 0 : i32
    return %c0_i32, %c0_i32_0 : i32, i32
  }
  func.func @transform_2(%arg0: i32) -> (i32, i32) {
    %c0_i32 = arith.constant 0 : i32
    %c0_i32_0 = arith.constant 0 : i32
    %c0_i32_1 = arith.constant 0 : i32
    return %c0_i32, %c0_i32_0 : i32, i32
  }
  func.func @transform_3(%arg0: i32) -> (i32, i32) {
    %c0_i32 = arith.constant 0 : i32
    %c0_i32_0 = arith.constant 0 : i32
    %c0_i32_1 = arith.constant 0 : i32
    return %c0_i32, %c0_i32_0 : i32, i32
  }
  func.func @transform_4(%arg0: i32) -> (i32, i32) {
    %c0_i32 = arith.constant 0 : i32
    %c0_i32_0 = arith.constant 0 : i32
    %c0_i32_1 = arith.constant 0 : i32
    return %c0_i32, %c0_i32_0 : i32, i32
  }
  func.func @transform_5(%arg0: i32) -> (i32, i32) {
    %c0_i32 = arith.constant 0 : i32
    %c0_i32_0 = arith.constant 0 : i32
    %c0_i32_1 = arith.constant 0 : i32
    return %c0_i32, %c0_i32_0 : i32, i32
  }
  func.func @transform_6(%arg0: i32) -> (i32, i32) {
    %c0_i32 = arith.constant 0 : i32
    %c0_i32_0 = arith.constant 0 : i32
    %c0_i32_1 = arith.constant 0 : i32
    return %c0_i32, %c0_i32_0 : i32, i32
  }
  func.func @transform_7(%arg0: i32) -> (i32, i32) {
    %c0_i32 = arith.constant 0 : i32
    %c0_i32_0 = arith.constant 0 : i32
    return %arg0, %c0_i32 : i32, i32
  }
}

</mosaic_0001>

<bundles_post_ra>
// kernel: tpu_custom_call.1
= control target key start
LH: loop header
LB: loop body
LE: loop exit
PB: predicated region body
PF: predicated region fallthrough
CT: control target
= control target key end

     0   :  { %12 = vsyncpa [#allocation3], 0  ;;  %s1010_s0 = inlined_call_operand.hbm [shape: f32[8,32], index: 0, kind: input, shape index: {}]   ;;  %s1011_s1 = inlined_call_operand.hbm [shape: bf16[32,256], index: 1, kind: input, shape index: {}]   ;;  %s1012_s2 = inlined_call_operand.vmem [shape: f32[1,256], index: 2, kind: input, shape index: {}]   ;;  %s1013_s3 = inlined_call_operand.hbm [shape: bf16[256,256], index: 3, kind: input, shape index: {}]   ;;  %s1014_s4 = inlined_call_operand.vmem [shape: f32[1,256], index: 4, kind: input, shape index: {}]   ;;  %s1015_s5 = inlined_call_operand.hbm [shape: bf16[256,128], index: 5, kind: input, shape index: {}]   ;;  %s1016_s6 = inlined_call_operand.vmem [shape: f32[1,128], index: 6, kind: input, shape index: {}]   ;;  %s1017_s7 = inlined_call_operand.hbm [shape: bf16[8,128], index: 7, kind: output, shape index: {}]  }
   0x1   :  { %13 = vsyncpa [#allocation6], 0 }
   0x2   :  { %14 = vsyncpa [#allocation9], 0 }
   0x3   :  { %15 = vsyncpa [#allocation4], 0  ;;  %s885_s24 = smov [#allocation5]   ;;  %s767_s28 = scalar_lea.hbm %s1011_s1, 512 }
   0x4   :  { %s31_s25 = sshll.u32 %s885_s24, 4  ;;  %p768_p0 = scmp.ne.s32.totalorder %s1011_s1, %s767_s28  ;;  %s32_s25 = int_to_ptr.vmem [resolvable:$true] %s31_s25 }
   0x5   :  { %p771_p1 = scmp.lt.u32.totalorder %s767_s28, %s1011_s1 }
   0x7   :  { %p773_p2 = pnand %p771_p1, %p768_p0 }
   0x9   :  { %776 = shalt.err (!%p773_p2)
}
   0xa   :  { %s777_s10 = scalar_lea.vmem %s32_s25, 512  ;;  %p782_p4 = scmp.lt.s32.totalorder %s32_s25, %s32_s25 }
   0xb   :  { %p778_p3 = scmp.ne.s32.totalorder %s32_s25, %s777_s10  ;;  %p783_p5 = scmp.lt.s32.totalorder %s777_s10, %s777_s10 }
   0xd   :  { %p784_p6 = por %p783_p5, %p782_p4 }
   0xf   :  { %p785_p7 = pnand %p784_p6, %p778_p3 }
  0x11   :  { %788 = shalt.err (!%p785_p7)
}
  0x12   :  { %s886_s11 = smov 128   ;;  %s887_s12 = smov 8  }
  0x13   :  { %37 = dma.hbm_to_vmem [thread:$0]  %s1011_s1, 512, %s32_s25, [#allocation6], %s886_s11, %s886_s11, %s887_s12  }
  0x14   :  { %s888_s15 = smov [#allocation2]   ;;  %s889_s17 = smov [#allocation7]  }
  0x15   :  { %s22_s16 = sshll.u32 %s888_s15, 4  ;;  %s45_s18 = sshll.u32 %s889_s17, 4  ;;  %s23_s16 = int_to_ptr.vmem [resolvable:$true] %s22_s16  ;;  %s46_s18 = int_to_ptr.vmem [resolvable:$true] %s45_s18 }
  0x16   :  { %s789_s21 = scalar_lea.hbm %s1010_s0, 128 }
  0x17   :  { %p790_p8 = scmp.ne.s32.totalorder %s1010_s0, %s789_s21  ;;  %p793_p9 = scmp.lt.u32.totalorder %s789_s21, %s1010_s0 }
  0x19   :  { %p795_p10 = pnand %p793_p9, %p790_p8 }
  0x1b   :  { %798 = shalt.err (!%p795_p10)
}
  0x1c   :  { %s799_s1 = scalar_lea.vmem %s23_s16, 128  ;;  %p804_p12 = scmp.lt.s32.totalorder %s23_s16, %s23_s16 }
  0x1d   :  { %p800_p11 = scmp.ne.s32.totalorder %s23_s16, %s799_s1  ;;  %p805_p13 = scmp.lt.s32.totalorder %s799_s1, %s799_s1 }
  0x1f   :  { %p806_p0 = por %p805_p13, %p804_p12 }
  0x21   :  { %p807_p1 = pnand %p806_p0, %p800_p11 }
  0x23   :  { %810 = shalt.err (!%p807_p1)
}
  0x24   :  { %25 = dma.hbm_to_vmem [thread:$0]  %s1010_s0, 128, %s23_s16, [#allocation3]  }
  0x25   :  { %s811_s30 = scalar_lea.hbm %s1013_s3, 4096 }
  0x26   :  { %p812_p2 = scmp.ne.s32.totalorder %s1013_s3, %s811_s30  ;;  %p815_p3 = scmp.lt.u32.totalorder %s811_s30, %s1013_s3 }
  0x28   :  { %p817_p4 = pnand %p815_p3, %p812_p2 }
  0x2a   :  { %820 = shalt.err (!%p817_p4)
}
  0x2b   :  { %s821_s14 = scalar_lea.vmem %s46_s18, 4096  ;;  %p826_p6 = scmp.lt.s32.totalorder %s46_s18, %s46_s18 }
  0x2c   :  { %p822_p5 = scmp.ne.s32.totalorder %s46_s18, %s821_s14  ;;  %p827_p7 = scmp.lt.s32.totalorder %s821_s14, %s821_s14 }
  0x2e   :  { %p828_p8 = por %p827_p7, %p826_p6 }
  0x30   :  { %p829_p9 = pnand %p828_p8, %p822_p5 }
  0x32   :  { %832 = shalt.err (!%p829_p9)
}
  0x33   :  { %51 = dma.hbm_to_vmem [thread:$0]  %s1013_s3, 4096, %s46_s18, [#allocation6], %s886_s11, %s886_s11, %s887_s12  }
  0x34   :  { %s890_s16 = smov [#allocation8]   ;;  %s833_s21 = scalar_lea.hbm %s1015_s5, 2048 }
  0x35   :  { %s59_s17 = sshll.u32 %s890_s16, 4  ;;  %p834_p10 = scmp.ne.s32.totalorder %s1015_s5, %s833_s21  ;;  %s60_s17 = int_to_ptr.vmem [resolvable:$true] %s59_s17 }
  0x36   :  { %p837_p11 = scmp.lt.u32.totalorder %s833_s21, %s1015_s5 }
  0x38   :  { %p839_p12 = pnand %p837_p11, %p834_p10 }
  0x3a   :  { %842 = shalt.err (!%p839_p12)
}
  0x3b   :  { %s843_s1 = scalar_lea.vmem %s60_s17, 2048  ;;  %p848_p0 = scmp.lt.s32.totalorder %s60_s17, %s60_s17 }
  0x3c   :  { %p844_p13 = scmp.ne.s32.totalorder %s60_s17, %s843_s1  ;;  %p849_p1 = scmp.lt.s32.totalorder %s843_s1, %s843_s1 }
  0x3e   :  { %p850_p2 = por %p849_p1, %p848_p0 }
  0x40   :  { %p851_p3 = pnand %p850_p2, %p844_p13 }
  0x42   :  { %854 = shalt.err (!%p851_p3)
}
  0x43   :  { %s891_s3 = smov 64   ;;  %s892_s11 = smov 4  }
  0x44   :  { %65 = dma.hbm_to_vmem [thread:$0]  %s1015_s5, 2048, %s60_s17, [#allocation9], %s891_s3, %s891_s3, %s892_s11  }
  0x45   :  { %877 = dma.done.wait [#allocation3], 128  }
  0x46   :  { %878 = vsyncadd [#allocation3], 4294967168 }
  0x47   :  { %879 = dma.done.wait [#allocation6], 4608  }
  0x48   :  { %880 = vsyncadd [#allocation6], 4294962688 }
  0x49   :  { %881 = dma.done.wait [#allocation9], 2048  }
  0x4a   :  { %882 = vsyncadd [#allocation9], 4294965248  ;;  %v893_v0 = vmov 0   ;;  %v697_v1 = vld [vmem:[#allocation5 + $0x4] ss:$8 sps:$4 sm:$0xff]   ;;  %v81_v5 = vld [vmem:[#allocation2] sm:$0xff]  ;;  %v89_v51 = vlaneseq }
  0x4b   :  { %155 = vmatprep.mubr.bf16.mxu0 %v893_v0  ;;  %v699_v2 = vld [vmem:[#allocation5] ss:$8 sps:$4 sm:$0xff]   ;;  %123 = vmatprep.subr.bf16.mxu0 %v697_v1  ;;  %v700_v3 = vld [vmem:[#allocation5 + $0x14] ss:$8 sps:$4 sm:$0xff]   ;;  %v702_v4 = vld [vmem:[#allocation5 + $0x10] ss:$8 sps:$4 sm:$0xff]   ;;  %v82_v9 = vpack.c.bf16 %v81_v5, %v81_v5 }
  0x4c   :  { %124 = vmatpush1.bf16.msra.mxu0 %v699_v2  ;;  %v703_v6 = vld [vmem:[#allocation7 + $0x4] ss:$8 sps:$4 sm:$0xff]   ;;  %v705_v7 = vld [vmem:[#allocation7] ss:$8 sps:$4 sm:$0xff]   ;;  %v706_v8 = vld [vmem:[#allocation7 + $0x14] ss:$8 sps:$4 sm:$0xff]  }
  0x4d   :  { %125 = vmatprep.subr.bf16.mxu0 %v700_v3  ;;  %372 = vmatprep.subr.bf16.mxu1 %v703_v6  ;;  %v708_v10 = vld [vmem:[#allocation7 + $0x10] ss:$8 sps:$4 sm:$0xff]   ;;  %vm119_vm0 = vcmask 261120   ;;  %v709_v11 = vld [vmem:[#allocation7 + $0x24] ss:$8 sps:$4 sm:$0xff]   ;;  %v90_v52 = vshrl.u32 %v89_v51, 7 }
  0x4e   :  { %373 = vmatpush1.bf16.msra.mxu1 %v705_v7  ;;  %v711_v12 = vld [vmem:[#allocation7 + $0x20] ss:$8 sps:$4 sm:$0xff]   ;;  %v712_v13 = vld [vmem:[#allocation7 + $0x34] ss:$8 sps:$4 sm:$0xff]   ;;  %v714_v14 = vld [vmem:[#allocation7 + $0x30] ss:$8 sps:$4 sm:$0xff]  }
  0x4f   :  { %374 = vmatprep.subr.bf16.mxu1 %v706_v8  ;;  %v715_v15 = vld [vmem:[#allocation7 + $0x44] ss:$8 sps:$4 sm:$0xff]   ;;  %v717_v16 = vld [vmem:[#allocation7 + $0x40] ss:$8 sps:$4 sm:$0xff]   ;;  %v718_v17 = vld [vmem:[#allocation7 + $0x54] ss:$8 sps:$4 sm:$0xff]  }
  0x50   :  { %126 = vmatpush1.bf16.msra.mxu0 %v702_v4  ;;  %v720_v18 = vld [vmem:[#allocation7 + $0x50] ss:$8 sps:$4 sm:$0xff]   ;;  %v721_v19 = vld [vmem:[#allocation7 + $0x64] ss:$8 sps:$4 sm:$0xff]   ;;  %v723_v20 = vld [vmem:[#allocation7 + $0x60] ss:$8 sps:$4 sm:$0xff]  }
  0x51   :  { %v724_v21 = vld [vmem:[#allocation7 + $0x74] ss:$8 sps:$4 sm:$0xff]   ;;  %v726_v22 = vld [vmem:[#allocation7 + $0x70] ss:$8 sps:$4 sm:$0xff]   ;;  %v727_v23 = vld [vmem:[#allocation7 + $0x84] ss:$8 sps:$4 sm:$0xff]  }
  0x52   :  { %375 = vmatpush1.bf16.msra.mxu1 %v708_v10  ;;  %v729_v24 = vld [vmem:[#allocation7 + $0x80] ss:$8 sps:$4 sm:$0xff]   ;;  %v730_v25 = vld [vmem:[#allocation7 + $0x94] ss:$8 sps:$4 sm:$0xff]   ;;  %v732_v26 = vld [vmem:[#allocation7 + $0x90] ss:$8 sps:$4 sm:$0xff]  }
  0x53   :  { %615 = vmatmul.mubr.msk.bf16.vlgmr.msra.gmra.mrb[0].mxu0 %vm119_vm0, %v82_v9  ;;  %376 = vmatprep.subr.bf16.mxu1 %v709_v11  ;;  %v733_v27 = vld [vmem:[#allocation7 + $0xa4] ss:$8 sps:$4 sm:$0xff]   ;;  %v735_v28 = vld [vmem:[#allocation7 + $0xa0] ss:$8 sps:$4 sm:$0xff]   ;;  %v736_v29 = vld [vmem:[#allocation7 + $0xb4] ss:$8 sps:$4 sm:$0xff]  }
  0x54   :  { %v738_v30 = vld [vmem:[#allocation7 + $0xb0] ss:$8 sps:$4 sm:$0xff]   ;;  %v739_v31 = vld [vmem:[#allocation7 + $0xc4] ss:$8 sps:$4 sm:$0xff]   ;;  %v741_v32 = vld [vmem:[#allocation7 + $0xc0] ss:$8 sps:$4 sm:$0xff]  }
  0x55   :  { %v742_v33 = vld [vmem:[#allocation7 + $0xd4] ss:$8 sps:$4 sm:$0xff]   ;;  %v744_v34 = vld [vmem:[#allocation7 + $0xd0] ss:$8 sps:$4 sm:$0xff]   ;;  %v745_v35 = vld [vmem:[#allocation7 + $0xe4] ss:$8 sps:$4 sm:$0xff]  }
  0x56   :  { %377 = vmatpush1.bf16.msra.mxu1 %v711_v12  ;;  %v747_v36 = vld [vmem:[#allocation7 + $0xe0] ss:$8 sps:$4 sm:$0xff]   ;;  %v748_v37 = vld [vmem:[#allocation7 + $0xf4] ss:$8 sps:$4 sm:$0xff]   ;;  %v750_v38 = vld [vmem:[#allocation7 + $0xf0] ss:$8 sps:$4 sm:$0xff]  }
  0x57   :  { %378 = vmatprep.subr.bf16.mxu1 %v712_v13  ;;  %v751_v39 = vld [vmem:[#allocation8 + $0x40] sm:$0xff]   ;;  %v753_v41 = vld [vmem:[#allocation8 + $0x48] sm:$0xff]   ;;  %v755_v43 = vld [vmem:[#allocation8 + $0x50] sm:$0xff]   ;;  %v91_v53 = vsub.s32 0, %v90_v52  ;;  %v95_v55 = vsub.s32 1, %v90_v52 }
  0x58   :  { %v752_v40 = vld [vmem:[#allocation8] sm:$0xff]   ;;  %665 = vmatprep.subr.bf16.mxu0 %v751_v39  ;;  %v754_v42 = vld [vmem:[#allocation8 + $0x8] sm:$0xff]   ;;  %v756_v44 = vld [vmem:[#allocation8 + $0x10] sm:$0xff]  }
  0x59   :  { %666 = vmatpush3.bf16.msra.mxu0 %v752_v40  ;;  %v757_v45 = vld [vmem:[#allocation8 + $0x58] sm:$0xff]   ;;  %v759_v47 = vld [vmem:[#allocation8 + $0x60] sm:$0xff]   ;;  %v761_v49 = vld [vmem:[#allocation8 + $0x68] sm:$0xff]  }
  0x5a   :  { %379 = vmatpush1.bf16.msra.mxu1 %v714_v14  ;;  %667 = vmatprep.subr.bf16.mxu0 %v753_v41  ;;  %v758_v46 = vld [vmem:[#allocation8 + $0x18] sm:$0xff]   ;;  %v760_v48 = vld [vmem:[#allocation8 + $0x20] sm:$0xff]   ;;  %v762_v50 = vld [vmem:[#allocation8 + $0x28] sm:$0xff]  }
  0x5b   :  { %380 = vmatprep.subr.bf16.mxu1 %v715_v15  ;;  %v87_v54 = vld [vmem:[%s1012_s2] sm:$0x3]  ;;  %v763_v4 = vld [vmem:[#allocation8 + $0x70] sm:$0xff]  }
  0x5c   :  { %v92_v56 = vrot.slane %v87_v54, %v91_v53  ;;  %v96_v57 = vrot.slane %v87_v54, %v95_v55  ;;  %v764_v5 = vld [vmem:[#allocation8 + $0x30] sm:$0xff]   ;;  %v765_v6 = vld [vmem:[#allocation8 + $0x78] sm:$0xff]  }
  0x5d   :  { %668 = vmatpush3.bf16.msra.mxu0 %v754_v42  ;;  %v766_v7 = vld [vmem:[#allocation8 + $0x38] sm:$0xff]  }
  0x5e   :  { %381 = vmatpush1.bf16.msra.mxu1 %v717_v16  ;;  %669 = vmatprep.subr.bf16.mxu0 %v755_v43  ;;  %v200_v8 = vld [vmem:[%s1014_s4] sm:$0x3]  ;;  %s894_s4 = smov [#allocation10]  }
  0x5f   :  { %382 = vmatprep.subr.bf16.mxu1 %v718_v17  ;;  %v205_v9 = vrot.slane %v200_v8, %v91_v53  ;;  %v209_v10 = vrot.slane %v200_v8, %v95_v55  ;;  %s600_s30 = sshll.u32 %s894_s4, 4  ;;  %s601_s30 = int_to_ptr.vmem [resolvable:$true] %s600_s30 }
  0x60   :  { %s855_s8 = scalar_lea.vmem %s601_s30, 64  ;;  %p860_p5 = scmp.lt.s32.totalorder %s601_s30, %s601_s30 }
  0x61   :  { %670 = vmatpush3.bf16.msra.mxu0 %v756_v44  ;;  %p856_p4 = scmp.ne.s32.totalorder %s601_s30, %s855_s8  ;;  %p861_p6 = scmp.lt.s32.totalorder %s855_s8, %s855_s8 }
  0x62   :  { %383 = vmatpush1.bf16.msra.mxu1 %v720_v18  ;;  %671 = vmatprep.subr.bf16.mxu0 %v757_v45 }
  0x63   :  { %384 = vmatprep.subr.bf16.mxu1 %v721_v19  ;;  %p862_p7 = por %p861_p6, %p860_p5 }
  0x65   :  { %672 = vmatpush3.bf16.msra.mxu0 %v758_v46  ;;  %p863_p8 = pnand %p862_p7, %p856_p4 }
  0x66   :  { %385 = vmatpush1.bf16.msra.mxu1 %v723_v20  ;;  %673 = vmatprep.subr.bf16.mxu0 %v759_v47 }
  0x67   :  { %386 = vmatprep.subr.bf16.mxu1 %v724_v21 }
  0x69   :  { %674 = vmatpush3.bf16.msra.mxu0 %v760_v48 }
  0x6a   :  { %387 = vmatpush1.bf16.msra.mxu1 %v726_v22  ;;  %675 = vmatprep.subr.bf16.mxu0 %v761_v49  ;;  %v648_v22 = vld [vmem:[%s1016_s6] ss:$0 sm:$0xff] }
  0x6b   :  { %388 = vmatprep.subr.bf16.mxu1 %v727_v23 }
  0x6d   :  { %676 = vmatpush3.bf16.msra.mxu0 %v762_v50 }
  0x6e   :  { %389 = vmatpush1.bf16.msra.mxu1 %v729_v24  ;;  %677 = vmatprep.subr.bf16.mxu0 %v763_v4 }
  0x6f   :  { %390 = vmatprep.subr.bf16.mxu1 %v730_v25 }
  0x71   :  { %678 = vmatpush3.bf16.msra.mxu0 %v764_v5 }
  0x72   :  { %391 = vmatpush1.bf16.msra.mxu1 %v732_v26  ;;  %679 = vmatprep.subr.bf16.mxu0 %v765_v6 }
  0x73   :  { %392 = vmatprep.subr.bf16.mxu1 %v733_v27 }
  0x75   :  { %680 = vmatpush3.bf16.msra.mxu0 %v766_v7 }
  0x76   :  { %393 = vmatpush1.bf16.msra.mxu1 %v735_v28 }
  0x77   :  { %394 = vmatprep.subr.bf16.mxu1 %v736_v29 }
  0x7a   :  { %395 = vmatpush1.bf16.msra.mxu1 %v738_v30 }
  0x7b   :  { %396 = vmatprep.subr.bf16.mxu1 %v739_v31 }
  0x7e   :  { %397 = vmatpush1.bf16.msra.mxu1 %v741_v32 }
  0x7f   :  { %398 = vmatprep.subr.bf16.mxu1 %v742_v33 }
  0x82   :  { %399 = vmatpush1.bf16.msra.mxu1 %v744_v34 }
  0x83   :  { %400 = vmatprep.subr.bf16.mxu1 %v745_v35 }
  0x86   :  { %401 = vmatpush1.bf16.msra.mxu1 %v747_v36 }
  0x87   :  { %402 = vmatprep.subr.bf16.mxu1 %v748_v37 }
  0x8a   :  { %403 = vmatpush1.bf16.msra.mxu1 %v750_v38 }
 0x126   :  { %v157_v58 = vpop.f32.mrb[0].mxu0 }
 0x127   :  { %v158_v59 = vadd.f32 %v157_v58, %v92_v56  ;;  %v159_v60 = vpop.f32.mrb[1].mxu0 }
 0x128   :  { %v160_v61 = vadd.f32 %v159_v60, %v96_v57  ;;  %v161_v62 = vpop.f32.mrb[2].mxu0 }
 0x129   :  { %v164_v63 = vmax.f32 %v158_v59, 0.0  ;;  %v162_v0 = vpop.f32.mrb[3].mxu0 }
 0x12a   :  { %v165_v1 = vmax.f32 %v160_v61, 0.0 }
 0x12b   :  { %v166_v3 = vpack.c.bf16 %v164_v63, %v164_v63 }
 0x12c   :  { %v167_v2 = vpack.c.bf16 %v165_v1, %v165_v1 }
 0x12e   :  { %404 = vmatprep.mubr.bf16.mxu1 %v167_v2 }
 0x12f   :  { %405 = vmatmul.mubr.bf16.vlgmr.msra.gmra.mrb[0].mxu1 %v166_v3 }
 0x202   :  { %v406_v11 = vpop.f32.mrb[0].mxu1 }
 0x203   :  { %v407_v12 = vadd.f32 %v406_v11, %v205_v9  ;;  %v408_v13 = vpop.f32.mrb[1].mxu1 }
 0x204   :  { %v409_v14 = vadd.f32 %v408_v13, %v209_v10  ;;  %v410_v15 = vpop.f32.mrb[2].mxu1 }
 0x205   :  { %v413_v16 = vmax.f32 %v407_v12, 0.0  ;;  %v411_v17 = vpop.f32.mrb[3].mxu1 }
 0x206   :  { %v414_v18 = vmax.f32 %v409_v14, 0.0 }
 0x207   :  { %v415_v20 = vpack.c.bf16 %v413_v16, %v413_v16 }
 0x208   :  { %v416_v19 = vpack.c.bf16 %v414_v18, %v414_v18 }
 0x20a   :  { %584 = vmatprep.mubr.bf16.mxu0 %v416_v19 }
 0x20b   :  { %585 = vmatmul.mubr.bf16.vlgmr.msra.gmra.mrb[4].mxu0 %v415_v20 }
 0x2de   :  { %v681_v21 = vpop.f32.mrb[4].mxu0 }
 0x2df   :  { %v682_v23 = vpop.f32.mrb[5].mxu0 }
 0x2e0   :  { %v683_v24 = vadd.f32 %v682_v23, %v681_v21  ;;  %v684_v25 = vpop.f32.mrb[6].mxu0 }
 0x2e1   :  { %v685_v26 = vpop.f32.mrb[7].mxu0 }
 0x2e2   :  { %v587_v27 = vadd.f32 %v683_v24, %v648_v22 }
 0x2e4   :  { %v592_v28 = vpack.c.bf16 %v587_v27, %v587_v27 }
 0x2e6   :  { %593 = vst [vmem:[#allocation10] sm:$0xf] %v592_v28 }
 0x2e7   :  { %866 = shalt.err (!%p863_p8)
}
 0x2e8   :  { %s867_s6 = scalar_lea.hbm %s1017_s7, 64 }
 0x2e9   :  { %p868_p9 = scmp.ne.s32.totalorder %s1017_s7, %s867_s6  ;;  %p871_p10 = scmp.lt.u32.totalorder %s867_s6, %s1017_s7 }
 0x2eb   :  { %p873_p11 = pnand %p871_p10, %p868_p9 }
 0x2ed   :  { %876 = shalt.err (!%p873_p11)
}
 0x2ee   :  { %603 = dma.vmem_to_hbm [thread:$0]  %s601_s30, 64, %s1017_s7, [#allocation4]  }
 0x2ef   :  { %883 = dma.done.wait [#allocation4], 64  }
 0x2f0   :  { %884 = vsyncadd [#allocation4], 4294967232 }
 0x2f1   :  { %607 = vsyncpa [#allocation3], 1 }
 0x2f2   :  { %608 = vsyncpa [#allocation6], 1 }
 0x2f3   :  { %609 = vsyncpa [#allocation9], 1 }
 0x2f4   :  { %610 = vsyncpa [#allocation4], 1 }

</bundles_post_ra>
